<compile_context>
chip_gen: v7x
topology: tpu7x:2x2x1
jax: 0.10.0
libtpu: 0.0.40
codegen_flags: <defaults>
</compile_context>

<pallas_src>
import functools

import jax
import jax.numpy as jnp
from jax.experimental import pallas as pl
from jax.experimental.pallas import tpu as pltpu


def _cnn_kernel(tok_ref, emb_ref, wconv_ref, bconv_ref, wfc_ref, bfc_ref, out_ref,
                *, B, l_pad, l_out, stride, kernel_heights):
    """Fused one-hot gather + conv (KH accumulated matmuls) + max-pool + bias/ReLU + FC.

    tok_ref   : (B*l_pad, 1)       int32  padded token ids (-1 on conv zero-pad rows)
    emb_ref   : (V_pad, E_pad)     f32    zero-padded embedding table
    wconv_ref : (KH, E_pad, C_pad) f32    conv weight, emb/channel zero-padded
    bconv_ref : (1, C_pad)         f32
    wfc_ref   : (C_pad, O_pad)     f32
    bfc_ref   : (1, O_pad)         f32
    out_ref   : (B, O_pad)         f32    single lane-dense full-block store
    """
    V_pad, E_pad = emb_ref.shape
    C_pad = wconv_ref.shape[-1]
    KH = kernel_heights
    n_rows = B * l_pad

    # 1) Embedding gather as ONE one-hot MXU matmul.  Rows whose token is -1
    #    (the conv's zero-padding rows) give an all-zero one-hot row -> zero
    #    embedding, so the padded sequence needs no separate zero-fill.
    pos_iota = jax.lax.broadcasted_iota(jnp.int32, (n_rows, V_pad), 1)
    one_hot = (pos_iota == tok_ref[...]).astype(jnp.float32)           # (B*l_pad, V_pad)
    x = jnp.dot(one_hot, emb_ref[...], preferred_element_type=jnp.float32)
    x = x.reshape(B, l_pad, E_pad)                                      # (B, l_pad, E_pad)

    # 2) Conv as KH accumulated lane-dense matmuls (no lane-axis im2col concat).
    hi = (l_out - 1) * stride + 1
    acc = jnp.zeros((B * l_out, C_pad), jnp.float32)
    for kh in range(KH):                                                # KH is tiny, static
        xs = x[:, kh:kh + hi:stride, :].reshape(B * l_out, E_pad)
        acc = acc + jnp.dot(xs, wconv_ref[kh], preferred_element_type=jnp.float32)

    # 3) Max-pool over time FIRST, then bias + ReLU (exact because +bias and ReLU
    #    are monotone, so they commute with max over time).
    pooled = jnp.max(acc.reshape(B, l_out, C_pad), axis=1)              # (B, C_pad)
    act = jnp.maximum(pooled + bconv_ref[...], 0.0)

    # 4) FC for the whole batch + one lane-dense full-block store.
    #    Dropout(p=0) == identity.
    out = jnp.dot(act, wfc_ref[...], preferred_element_type=jnp.float32) + bfc_ref[...]
    out_ref[...] = out.astype(out_ref.dtype)


def cnn_forward(tokens, params, *, kernel_heights, stride, padding):
    """Full forward pass; gather, pad, conv, relu, pool and fc all run in one
    Pallas kernel.  The wrapper only lane-pads weights and slices the output."""
    emb_table = params["emb"]            # (V, E)
    wconv = params["conv_w"]             # (KH, E, C)
    bconv = params["conv_b"]             # (1, C)
    wfc = params["fc_w"]                 # (C, O)
    bfc = params["fc_b"]                 # (1, O)

    V, E = emb_table.shape
    KH = kernel_heights
    C = wconv.shape[-1]
    O = wfc.shape[1]
    B, S = tokens.shape

    l_pad = S + 2 * padding
    l_out = (l_pad - KH) // stride + 1

    lane = 128
    v_pad = lane * pl.cdiv(V, lane)
    e_pad = lane * pl.cdiv(E, lane)
    c_pad = lane * pl.cdiv(C, lane)
    o_pad = lane * pl.cdiv(O, lane)

    # Zero-pad everything to lane-dense (multiple-of-128) shapes; the padded
    # rows/cols are zero so they never change the math.
    f32 = jnp.float32
    emb_p = jnp.pad(emb_table, ((0, v_pad - V), (0, e_pad - E))).astype(f32)
    wconv_p = jnp.pad(wconv, ((0, 0), (0, e_pad - E), (0, c_pad - C))).astype(f32)
    bconv_p = jnp.pad(bconv, ((0, 0), (0, c_pad - C))).astype(f32)
    wfc_p = jnp.pad(wfc, ((0, c_pad - C), (0, o_pad - O))).astype(f32)
    bfc_p = jnp.pad(bfc, ((0, 0), (0, o_pad - O))).astype(f32)

    # Conv zero-padding rows carry token -1 -> all-zero one-hot row -> zero embedding.
    tok_p = jnp.pad(tokens.astype(jnp.int32), ((0, 0), (padding, padding)),
                    constant_values=-1).reshape(B * l_pad, 1)

    kernel = functools.partial(_cnn_kernel, B=B, l_pad=l_pad, l_out=l_out,
                               stride=stride, kernel_heights=KH)
    vmem = lambda: pl.BlockSpec(memory_space=pltpu.MemorySpace.VMEM)

    # NOTE: at these toy sizes a grid-less single invocation is right.  At scale:
    #  * keep the embedding table in HBM (memory_space=pl.ANY) with a pipelined
    #    DMA gather on v7x (64 MiB VMEM), cast weights to bf16, and
    #  * add a batch grid axis marked "parallel" so both v7x TensorCores are used.
    out = pl.pallas_call(
        kernel,
        out_shape=jax.ShapeDtypeStruct((B, o_pad), jnp.float32),
        in_specs=[vmem(),   # padded tokens      (B*l_pad, 1) int32
                  vmem(),   # embedding table    (V_pad, E_pad)
                  vmem(),   # conv weight        (KH, E_pad, C_pad)
                  vmem(),   # conv bias          (1, C_pad)
                  vmem(),   # fc weight          (C_pad, O_pad)
                  vmem()],  # fc bias            (1, O_pad)
        out_specs=vmem(),
    )(tok_p, emb_p, wconv_p, bconv_p, wfc_p, bfc_p)
    return out[:, :O]


def cnn_reference(tokens, params, *, kernel_heights, stride, padding):
    """Pure-JAX reference mirroring the PyTorch forward."""
    emb = jnp.take(params["emb"], tokens, axis=0)
    emb_pad = jnp.pad(emb, ((0, 0), (padding, padding), (0, 0)))
    S = tokens.shape[1]
    l_pad = S + 2 * padding
    l_out = (l_pad - kernel_heights) // stride + 1
    wins = jnp.stack(
        [emb_pad[:, kh:kh + (l_out - 1) * stride + 1:stride, :]
         for kh in range(kernel_heights)], axis=2)                  # (B, l_out, KH, E)
    conv = jnp.einsum("blke,kec->blc", wins, params["conv_w"]) + params["conv_b"][0]
    act = jnp.maximum(conv, 0.0)
    pooled = jnp.max(act, axis=1)
    return pooled @ params["fc_w"] + params["fc_b"][0]


if __name__ == "__main__":
    # Module hyper-parameters (small, consistent with the forward pass).
    vocab_size, emb_size, padding_idx = 50, 32, 0
    output_size, out_channels = 4, 16
    kernel_heights, stride, padding = 3, 1, 1
    B, S = 2, 8

    key = jax.random.PRNGKey(0)
    k_emb, k_cw, k_cb, k_fw, k_fb, k_tok = jax.random.split(key, 6)

    # nn.Embedding(vocab_size, emb_size, padding_idx) -- padding_idx row zeroed.
    emb_table = jax.random.normal(k_emb, (vocab_size, emb_size), jnp.float32)
    emb_table = emb_table.at[padding_idx].set(0.0)

    # nn.Conv2d(1, out_channels, (kernel_heights, emb_size)) weight (C,1,KH,E) -> (KH,E,C).
    conv_w_t = jax.random.normal(
        k_cw, (out_channels, 1, kernel_heights, emb_size), jnp.float32) * 0.1
    conv_w = jnp.transpose(conv_w_t[:, 0], (1, 2, 0))               # (KH, E, C)
    conv_b = (jax.random.normal(k_cb, (out_channels,), jnp.float32) * 0.1
              ).reshape(1, out_channels)

    # nn.Linear(out_channels, output_size) weight (O,C) -> (C,O).
    fc_w_t = jax.random.normal(k_fw, (output_size, out_channels), jnp.float32) * 0.1
    fc_w = fc_w_t.T
    fc_b = (jax.random.normal(k_fb, (output_size,), jnp.float32) * 0.1
            ).reshape(1, output_size)

    tokens = jax.random.randint(k_tok, (B, S), 0, vocab_size, dtype=jnp.int32)

    params = dict(emb=emb_table, conv_w=conv_w, conv_b=conv_b, fc_w=fc_w, fc_b=fc_b)

    out = cnn_forward(tokens, params, kernel_heights=kernel_heights,
                      stride=stride, padding=padding)
    out = jax.block_until_ready(out)
    assert out.shape == (B, output_size), out.shape

    ref = cnn_reference(tokens, params, kernel_heights=kernel_heights,
                        stride=stride, padding=padding)
    assert jnp.allclose(out, ref, rtol=1e-4, atol=1e-4), (out, ref)

    print("KERNEL_OK")
</pallas_src>

<mosaic_0001>
module attributes {stable_mosaic.version = 11 : i64} {
  func.func @_cnn_kernel(%arg0: memref<20x1xi32, #tpu.memory_space<vmem>>, %arg1: memref<128x128xf32, #tpu.memory_space<vmem>>, %arg2: memref<3x128x128xf32, #tpu.memory_space<vmem>>, %arg3: memref<1x128xf32, #tpu.memory_space<vmem>>, %arg4: memref<128x128xf32, #tpu.memory_space<vmem>>, %arg5: memref<1x128xf32, #tpu.memory_space<vmem>>, %arg6: memref<2x128xf32, #tpu.memory_space<vmem>>) attributes {dimension_semantics = [], scalar_prefetch = 0 : i64, scratch_operands = 0 : i64, tpu.core_type = #tpu.core_type<tc>} {
    %0 = tpu.iota {dimensions = array<i32: 1>} : vector<20x128xi32>
    %c0 = arith.constant 0 : index
    %c0_0 = arith.constant 0 : index
    %1 = vector.load %arg0[%c0, %c0_0] : memref<20x1xi32, #tpu.memory_space<vmem>>, vector<20x1xi32>
    %2 = vector.broadcast %1 : vector<20x1xi32> to vector<20x128xi32>
    %3 = arith.cmpi eq, %0, %2 : vector<20x128xi32>
    %4 = arith.extui %3 : vector<20x128xi1> to vector<20x128xi32>
    %5 = arith.sitofp %4 : vector<20x128xi32> to vector<20x128xf32>
    %c0_1 = arith.constant 0 : index
    %c0_2 = arith.constant 0 : index
    %6 = vector.load %arg1[%c0_1, %c0_2] : memref<128x128xf32, #tpu.memory_space<vmem>>, vector<128x128xf32>
    %cst = arith.constant dense<0.000000e+00> : vector<20x128xf32>
    %7 = tpu.matmul %5, %6, %cst {dimension_numbers = #tpu.dot_dimension_numbers<[1], [0], [0], [1], [0, 0, 1, 1], [], []>} : vector<20x128xf32>, vector<128x128xf32>, vector<20x128xf32> -> vector<20x128xf32>
    %8 = vector.shape_cast %7 : vector<20x128xf32> to vector<2x10x128xf32>
    %cst_3 = arith.constant 0.000000e+00 : f32
    %9 = vector.broadcast %cst_3 : f32 to vector<16x128xf32>
    %10 = vector.extract_strided_slice %8 {offsets = [0, 0, 0], sizes = [2, 8, 128], strides = [1, 1, 1]} : vector<2x10x128xf32> to vector<2x8x128xf32>
    %11 = vector.shape_cast %10 : vector<2x8x128xf32> to vector<16x128xf32>
    %c0_4 = arith.constant 0 : index
    %c0_5 = arith.constant 0 : index
    %c0_6 = arith.constant 0 : index
    %12 = vector.load %arg2[%c0_4, %c0_5, %c0_6] : memref<3x128x128xf32, #tpu.memory_space<vmem>>, vector<1x128x128xf32>
    %13 = vector.shape_cast %12 : vector<1x128x128xf32> to vector<128x128xf32>
    %cst_7 = arith.constant dense<0.000000e+00> : vector<16x128xf32>
    %14 = tpu.matmul %11, %13, %cst_7 {dimension_numbers = #tpu.dot_dimension_numbers<[1], [0], [0], [1], [0, 0, 1, 1], [], []>} : vector<16x128xf32>, vector<128x128xf32>, vector<16x128xf32> -> vector<16x128xf32>
    %15 = arith.addf %9, %14 : vector<16x128xf32>
    %16 = vector.extract_strided_slice %8 {offsets = [0, 1, 0], sizes = [2, 8, 128], strides = [1, 1, 1]} : vector<2x10x128xf32> to vector<2x8x128xf32>
    %17 = vector.shape_cast %16 : vector<2x8x128xf32> to vector<16x128xf32>
    %c1 = arith.constant 1 : index
    %c0_8 = arith.constant 0 : index
    %c0_9 = arith.constant 0 : index
    %18 = vector.load %arg2[%c1, %c0_8, %c0_9] : memref<3x128x128xf32, #tpu.memory_space<vmem>>, vector<1x128x128xf32>
    %19 = vector.shape_cast %18 : vector<1x128x128xf32> to vector<128x128xf32>
    %cst_10 = arith.constant dense<0.000000e+00> : vector<16x128xf32>
    %20 = tpu.matmul %17, %19, %cst_10 {dimension_numbers = #tpu.dot_dimension_numbers<[1], [0], [0], [1], [0, 0, 1, 1], [], []>} : vector<16x128xf32>, vector<128x128xf32>, vector<16x128xf32> -> vector<16x128xf32>
    %21 = arith.addf %15, %20 : vector<16x128xf32>
    %22 = vector.extract_strided_slice %8 {offsets = [0, 2, 0], sizes = [2, 8, 128], strides = [1, 1, 1]} : vector<2x10x128xf32> to vector<2x8x128xf32>
    %23 = vector.shape_cast %22 : vector<2x8x128xf32> to vector<16x128xf32>
    %c2 = arith.constant 2 : index
    %c0_11 = arith.constant 0 : index
    %c0_12 = arith.constant 0 : index
    %24 = vector.load %arg2[%c2, %c0_11, %c0_12] : memref<3x128x128xf32, #tpu.memory_space<vmem>>, vector<1x128x128xf32>
    %25 = vector.shape_cast %24 : vector<1x128x128xf32> to vector<128x128xf32>
    %cst_13 = arith.constant dense<0.000000e+00> : vector<16x128xf32>
    %26 = tpu.matmul %23, %25, %cst_13 {dimension_numbers = #tpu.dot_dimension_numbers<[1], [0], [0], [1], [0, 0, 1, 1], [], []>} : vector<16x128xf32>, vector<128x128xf32>, vector<16x128xf32> -> vector<16x128xf32>
    %27 = arith.addf %21, %26 : vector<16x128xf32>
    %28 = vector.shape_cast %27 : vector<16x128xf32> to vector<2x8x128xf32>
    %cst_14 = arith.constant dense<0xFF800000> : vector<2x128xf32>
    %29 = vector.multi_reduction <maximumf>, %28, %cst_14 [1] : vector<2x8x128xf32> to vector<2x128xf32>
    %c0_15 = arith.constant 0 : index
    %c0_16 = arith.constant 0 : index
    %30 = vector.load %arg3[%c0_15, %c0_16] : memref<1x128xf32, #tpu.memory_space<vmem>>, vector<1x128xf32>
    %31 = vector.broadcast %30 : vector<1x128xf32> to vector<2x128xf32>
    %32 = arith.addf %29, %31 : vector<2x128xf32>
    %cst_17 = arith.constant 0.000000e+00 : f32
    %33 = vector.broadcast %cst_17 : f32 to vector<2x128xf32>
    %34 = arith.maximumf %32, %33 : vector<2x128xf32>
    %c0_18 = arith.constant 0 : index
    %c0_19 = arith.constant 0 : index
    %35 = vector.load %arg4[%c0_18, %c0_19] : memref<128x128xf32, #tpu.memory_space<vmem>>, vector<128x128xf32>
    %cst_20 = arith.constant dense<0.000000e+00> : vector<2x128xf32>
    %36 = tpu.matmul %34, %35, %cst_20 {dimension_numbers = #tpu.dot_dimension_numbers<[1], [0], [0], [1], [0, 0, 1, 1], [], []>} : vector<2x128xf32>, vector<128x128xf32>, vector<2x128xf32> -> vector<2x128xf32>
    %c0_21 = arith.constant 0 : index
    %c0_22 = arith.constant 0 : index
    %37 = vector.load %arg5[%c0_21, %c0_22] : memref<1x128xf32, #tpu.memory_space<vmem>>, vector<1x128xf32>
    %38 = vector.broadcast %37 : vector<1x128xf32> to vector<2x128xf32>
    %39 = arith.addf %36, %38 : vector<2x128xf32>
    %c0_23 = arith.constant 0 : index
    %c0_24 = arith.constant 0 : index
    %40 = vector.load %arg6[%c0_23, %c0_24] : memref<2x128xf32, #tpu.memory_space<vmem>>, vector<2x128xf32>
    tpu.vector_store %arg6[%c0_23, %c0_24], %39 {strides = array<i32>} : memref<2x128xf32, #tpu.memory_space<vmem>>, vector<2x128xf32>,
    return
  }
}

</mosaic_0001>

<bundles_post_ra>
// kernel: tpu_custom_call.1
= control target key start
LH: loop header
LB: loop body
LE: loop exit
PB: predicated region body
PF: predicated region fallthrough
CT: control target
= control target key end

     0   :  { %11 = vsyncpa [#allocation3], 0  ;;  %s1531_s0 = inlined_call_operand.vmem [shape: s32[20,1], index: 0, kind: input, shape index: {}]   ;;  %s1532_s1 = inlined_call_operand.hbm [shape: f32[128,128], index: 1, kind: input, shape index: {}]   ;;  %s1533_s2 = inlined_call_operand.hbm [shape: f32[3,128,128], index: 2, kind: input, shape index: {}]   ;;  %s1534_s3 = inlined_call_operand.vmem [shape: f32[1,128], index: 3, kind: input, shape index: {}]   ;;  %s1535_s4 = inlined_call_operand.hbm [shape: f32[128,128], index: 4, kind: input, shape index: {}]   ;;  %s1536_s5 = inlined_call_operand.vmem [shape: f32[1,128], index: 5, kind: input, shape index: {}]   ;;  %s1537_s6 = inlined_call_operand.hbm [shape: f32[2,128], index: 6, kind: output, shape index: {}]  }
   0x1   :  { %12 = vsyncpa [#allocation6], 0 }
   0x2   :  { %13 = vsyncpa [#allocation4], 0  ;;  %s1323_s21 = smov [#allocation5]   ;;  %s1324_s23 = smov [#allocation2]  }
   0x3   :  { %s33_s22 = sshll.u32 %s1323_s21, 4  ;;  %s21_s24 = sshll.u32 %s1324_s23, 4  ;;  %s34_s22 = int_to_ptr.vmem [resolvable:$true] %s33_s22  ;;  %s1370_s24 = int_to_ptr.vmem [resolvable:$true] %s21_s24 }
   0x4   :  { %s1229_s27 = scalar_lea.hbm %s1533_s2, 6144 }
   0x5   :  { %p1230_p0 = scmp.ne.s32.totalorder %s1533_s2, %s1229_s27  ;;  %p1233_p1 = scmp.lt.u32.totalorder %s1229_s27, %s1533_s2 }
   0x7   :  { %p1235_p2 = pnand %p1233_p1, %p1230_p0 }
   0x9   :  { %1238 = shalt.err (!%p1235_p2)
}
   0xa   :  { %s1239_s8 = scalar_lea.vmem %s34_s22, 6144  ;;  %p1244_p4 = scmp.lt.s32.totalorder %s34_s22, %s34_s22 }
   0xb   :  { %p1240_p3 = scmp.ne.s32.totalorder %s34_s22, %s1239_s8  ;;  %p1245_p5 = scmp.lt.s32.totalorder %s1239_s8, %s1239_s8 }
   0xd   :  { %p1246_p6 = por %p1245_p5, %p1244_p4 }
   0xf   :  { %p1247_p7 = pnand %p1246_p6, %p1240_p3 }
  0x11   :  { %1250 = shalt.err (!%p1247_p7)
}
  0x12   :  { %s1325_s9 = smov 128   ;;  %s1326_s10 = smov 8  }
  0x13   :  { %39 = dma.hbm_to_vmem [thread:$0]  %s1533_s2, 6144, %s34_s22, [#allocation6], %s1325_s9, %s1325_s9, %s1326_s10  }
  0x14   :  { %s1251_s15 = scalar_lea.hbm %s1532_s1, 2048 }
  0x15   :  { %p1252_p8 = scmp.ne.s32.totalorder %s1532_s1, %s1251_s15  ;;  %p1255_p9 = scmp.lt.u32.totalorder %s1251_s15, %s1532_s1 }
  0x17   :  { %p1257_p10 = pnand %p1255_p9, %p1252_p8 }
  0x19   :  { %1260 = shalt.err (!%p1257_p10)
}
  0x1a   :  { %s1261_s20 = scalar_lea.vmem %s1370_s24, 2048  ;;  %p1266_p12 = scmp.lt.s32.totalorder %s1370_s24, %s1370_s24 }
  0x1b   :  { %p1262_p11 = scmp.ne.s32.totalorder %s1370_s24, %s1261_s20  ;;  %p1267_p13 = scmp.lt.s32.totalorder %s1261_s20, %s1261_s20 }
  0x1d   :  { %p1268_p0 = por %p1267_p13, %p1266_p12 }
  0x1f   :  { %p1269_p1 = pnand %p1268_p0, %p1262_p11 }
  0x21   :  { %1272 = shalt.err (!%p1269_p1)
}
  0x22   :  { %27 = dma.hbm_to_vmem [thread:$0]  %s1532_s1, 2048, %s1370_s24, [#allocation3], %s1325_s9, %s1325_s9, %s1326_s10  }
  0x23   :  { %s1327_s22 = smov [#allocation7]   ;;  %s1273_s27 = scalar_lea.hbm %s1535_s4, 2048 }
  0x24   :  { %s47_s23 = sshll.u32 %s1327_s22, 4  ;;  %p1274_p2 = scmp.ne.s32.totalorder %s1535_s4, %s1273_s27  ;;  %s48_s23 = int_to_ptr.vmem [resolvable:$true] %s47_s23 }
  0x25   :  { %p1277_p3 = scmp.lt.u32.totalorder %s1273_s27, %s1535_s4 }
  0x27   :  { %p1279_p4 = pnand %p1277_p3, %p1274_p2 }
  0x29   :  { %1282 = shalt.err (!%p1279_p4)
}
  0x2a   :  { %s1283_s8 = scalar_lea.vmem %s48_s23, 2048  ;;  %p1288_p6 = scmp.lt.s32.totalorder %s48_s23, %s48_s23 }
  0x2b   :  { %p1284_p5 = scmp.ne.s32.totalorder %s48_s23, %s1283_s8  ;;  %p1289_p7 = scmp.lt.s32.totalorder %s1283_s8, %s1283_s8 }
  0x2d   :  { %p1290_p8 = por %p1289_p7, %p1288_p6 }
  0x2f   :  { %p1291_p9 = pnand %p1290_p8, %p1284_p5 }
  0x31   :  { %1294 = shalt.err (!%p1291_p9)
}
  0x32   :  { %53 = dma.hbm_to_vmem [thread:$0]  %s1535_s4, 2048, %s48_s23, [#allocation6], %s1325_s9, %s1325_s9, %s1326_s10  }
  0x33   :  { %1317 = dma.done.wait [#allocation3], 2048  }
  0x34   :  { %1318 = vsyncadd [#allocation3], 4294965248 }
  0x35   :  { %1319 = dma.done.wait [#allocation6], 8192  }
  0x36   :  { %1320 = vsyncadd [#allocation6], 4294959104  ;;  %v1328_v0 = vmov 0   ;;  %v1329_v1 = vmov 0.0|0.0   ;;  %v67_v2 = vld [vmem:[%s1531_s0] sm:$0xff]  ;;  %v89_v5 = vld [vmem:[#allocation2 + $0x8] sm:$0xff]  ;;  %v65_v39 = vlaneseq }
  0x37   :  { %1227 = vset.pattern.permute.xlu0 %v1328_v0  ;;  %1228 = vset.pattern.permute.xlu1 %v1328_v0  ;;  %v69_v3 = vld [vmem:[%s1531_s0 + $0x10] sm:$0xf]  ;;  %v88_v4 = vld [vmem:[#allocation2] sm:$0xff]  ;;  %v68_v7 = vld [vmem:[%s1531_s0 + $0x8] sm:$0xff]  ;;  %vm1330_vm0 = vmmov 0   ;;  %v1331_v10 = vmov 0.0  }
  0x38   :  { %1067 = vmatprep.subr.bf16.mxu0 %v1329_v1  ;;  %71 = vperm.xlu0 %1227, %v67_v2   ;;  %v90_v6 = vld [vmem:[#allocation2 + $0x10] sm:$0xff]  ;;  %v1068_v8 = vpack.c.bf16 %v89_v5, %v88_v4  ;;  %v91_v9 = vld [vmem:[#allocation2 + $0x18] sm:$0xff]  ;;  %v92_v12 = vld [vmem:[#allocation2 + $0x20] sm:$0xff]  ;;  %v66_v40 = vand.u32 127, %v65_v39  ;;  %v1332_v42 = vmov 1.0   ;;  %vm245_vm4 = vcmask 1040384  }
  0x39   :  { %77 = vperm.xlu1 %1228, %v69_v3   ;;  %918 = vmatprep.mubr.msk.f32.mxu0 %vm1330_vm0, %v1331_v10  ;;  %v1071_v11 = vpack.c.bf16 %v91_v9, %v90_v6  ;;  %v93_v13 = vld [vmem:[#allocation2 + $0x28] sm:$0xff]  ;;  %v94_v15 = vld [vmem:[#allocation2 + $0x30] sm:$0xff]  ;;  %v95_v16 = vld [vmem:[#allocation2 + $0x38] sm:$0xff]  ;;  %v1333_v9 = vmov 1983009808   ;;  %vm246_vm5 = vcmask 1042434  }
  0x3a   :  { %1069 = vmatpush3.bf16.msra.mxu0 %v1068_v8  ;;  %v1074_v14 = vpack.c.bf16 %v93_v13, %v92_v12  ;;  %v279_v17 = vld [vmem:[#allocation5 + $0x80] sm:$0xff]  ;;  %v280_v18 = vld [vmem:[#allocation5 + $0x88] sm:$0xff]  ;;  %v281_v19 = vld [vmem:[#allocation5 + $0x90] sm:$0xff]  ;;  %v1077_v22 = vpack.c.bf16 %v95_v16, %v94_v15  ;;  %v192_v12 = vshrl.u32 %v65_v39, 7  ;;  %vm248_vm7 = vcmask 1044484   ;;  %s1334_s17 = smov [#allocation8]  }
  0x3b   :  { %1070 = vmatprep.subr.bf16.mxu0 %v1329_v1  ;;  %v1091_v20 = vpack.c.bf16 %v280_v18, %v279_v17  ;;  %v282_v21 = vld [vmem:[#allocation5 + $0x98] sm:$0xff]  ;;  %v283_v24 = vld [vmem:[#allocation5 + $0xa0] sm:$0xff]  ;;  %v284_v25 = vld [vmem:[#allocation5 + $0xa8] sm:$0xff]  ;;  %vm250_vm9 = vcmask 1046534   ;;  %vm696_vm11 = vcmask 1041409   ;;  %s776_s18 = sshll.u32 %s1334_s17, 4  ;;  %s777_s18 = int_to_ptr.vmem [resolvable:$true] %s776_s18 }
  0x3c   :  { %74 = vperm.xlu0 %1227, %v68_v7   ;;  %v1095_v23 = vpack.c.bf16 %v282_v21, %v281_v19  ;;  %v96_v26 = vld [vmem:[#allocation2 + $0x40] sm:$0xff]  ;;  %v97_v27 = vld [vmem:[#allocation2 + $0x48] sm:$0xff]  ;;  %v1099_v28 = vpack.c.bf16 %v284_v25, %v283_v24  ;;  %v98_v30 = vld [vmem:[#allocation2 + $0x50] sm:$0xff]  ;;  %p1300_p11 = scmp.lt.s32.totalorder %s777_s18, %s777_s18 }
  0x3d   :  { %1092 = vmatprep.subr.bf16.mxu1 %v1091_v20  ;;  %v1080_v29 = vpack.c.bf16 %v97_v27, %v96_v26  ;;  %v99_v31 = vld [vmem:[#allocation2 + $0x58] sm:$0xff]  ;;  %v100_v33 = vld [vmem:[#allocation2 + $0x60] sm:$0xff]  ;;  %v101_v34 = vld [vmem:[#allocation2 + $0x68] sm:$0xff] }
  0x3e   :  { %1072 = vmatpush3.bf16.msra.mxu0 %v1071_v11  ;;  %1094 = vmatpush3.bf16.msra.mxu1 %v1091_v20  ;;  %v1083_v32 = vpack.c.bf16 %v99_v31, %v98_v30  ;;  %v1086_v35 = vpack.c.bf16 %v101_v34, %v100_v33  ;;  %v102_v36 = vld [vmem:[#allocation2 + $0x70] sm:$0xff]  ;;  %v103_v37 = vld [vmem:[#allocation2 + $0x78] sm:$0xff]  ;;  %v287_v48 = vld [vmem:[#allocation5 + $0xc0] sm:$0xff] }
  0x3f   :  { %1073 = vmatprep.subr.bf16.mxu0 %v1329_v1  ;;  %1096 = vmatprep.subr.bf16.mxu1 %v1095_v23  ;;  %v1089_v38 = vpack.c.bf16 %v103_v37, %v102_v36  ;;  %v285_v45 = vld [vmem:[#allocation5 + $0xb0] sm:$0xff]  ;;  %v286_v46 = vld [vmem:[#allocation5 + $0xb8] sm:$0xff]  ;;  %v288_v49 = vld [vmem:[#allocation5 + $0xc8] sm:$0xff] }
  0x40   :  { %v1103_v47 = vpack.c.bf16 %v286_v46, %v285_v45  ;;  %v1107_v50 = vpack.c.bf16 %v288_v49, %v287_v48  ;;  %v289_v51 = vld [vmem:[#allocation5 + $0xd0] sm:$0xff]  ;;  %v290_v52 = vld [vmem:[#allocation5 + $0xd8] sm:$0xff]  ;;  %v291_v54 = vld [vmem:[#allocation5 + $0xe0] sm:$0xff] }
  0x41   :  { %v1111_v53 = vpack.c.bf16 %v290_v52, %v289_v51  ;;  %v292_v55 = vld [vmem:[#allocation5 + $0xe8] sm:$0xff]  ;;  %v293_v57 = vld [vmem:[#allocation5 + $0xf0] sm:$0xff]  ;;  %v294_v58 = vld [vmem:[#allocation5 + $0xf8] sm:$0xff] }
  0x42   :  { %1075 = vmatpush3.bf16.msra.mxu0 %v1074_v14  ;;  %1098 = vmatpush3.bf16.msra.mxu1 %v1095_v23  ;;  %v1115_v56 = vpack.c.bf16 %v292_v55, %v291_v54  ;;  %v1119_v59 = vpack.c.bf16 %v294_v58, %v293_v57  ;;  %v229_v60 = vld [vmem:[#allocation5] sm:$0xff]  ;;  %v230_v61 = vld [vmem:[#allocation5 + $0x8] sm:$0xff]  ;;  %v672_v2 = vld [vmem:[#allocation7 + $0x10] sm:$0xff] }
  0x43   :  { %1076 = vmatprep.subr.bf16.mxu0 %v1329_v1  ;;  %1100 = vmatprep.subr.bf16.mxu1 %v1099_v28  ;;  %v1448_v62 = vpack.c.bf16 %v230_v61, %v229_v60  ;;  %v670_v63 = vld [vmem:[#allocation7] sm:$0xff]  ;;  %v671_v0 = vld [vmem:[#allocation7 + $0x8] sm:$0xff]  ;;  %v673_v4 = vld [vmem:[#allocation7 + $0x18] sm:$0xff] }
  0x44   :  { %v1188_v3 = vpack.c.bf16 %v671_v0, %v670_v63  ;;  %v1191_v5 = vpack.c.bf16 %v673_v4, %v672_v2  ;;  %v674_v6 = vld [vmem:[#allocation7 + $0x20] sm:$0xff]  ;;  %v675_v7 = vld [vmem:[#allocation7 + $0x28] sm:$0xff]  ;;  %vm247_vm6 = vmor %vm245_vm4, %vm246_vm5 }
  0x45   :  { %v1194_v8 = vpack.c.bf16 %v675_v7, %v674_v6  ;;  %vm249_vm8 = vmor %vm247_vm6, %vm248_vm7 }
  0x46   :  { %1078 = vmatpush3.bf16.msra.mxu0 %v1077_v22  ;;  %1102 = vmatpush3.bf16.msra.mxu1 %v1099_v28  ;;  %vm1459_vm10 = vmor %vm249_vm8, %vm250_vm9 }
  0x47   :  { %1079 = vmatprep.subr.bf16.mxu0 %v1329_v1  ;;  %1104 = vmatprep.subr.bf16.mxu1 %v1103_v47 }
  0x4a   :  { %1081 = vmatpush3.bf16.msra.mxu0 %v1080_v29  ;;  %1106 = vmatpush3.bf16.msra.mxu1 %v1103_v47 }
  0x4b   :  { %1082 = vmatprep.subr.bf16.mxu0 %v1329_v1  ;;  %1108 = vmatprep.subr.bf16.mxu1 %v1107_v50 }
  0x4e   :  { %1084 = vmatpush3.bf16.msra.mxu0 %v1083_v32  ;;  %1110 = vmatpush3.bf16.msra.mxu1 %v1107_v50 }
  0x4f   :  { %1085 = vmatprep.subr.bf16.mxu0 %v1329_v1  ;;  %1112 = vmatprep.subr.bf16.mxu1 %v1111_v53 }
  0x52   :  { %1087 = vmatpush3.bf16.msra.mxu0 %v1086_v35  ;;  %1114 = vmatpush3.bf16.msra.mxu1 %v1111_v53 }
  0x53   :  { %1088 = vmatprep.subr.bf16.mxu0 %v1329_v1  ;;  %1116 = vmatprep.subr.bf16.mxu1 %v1115_v56 }
  0x56   :  { %1090 = vmatpush3.bf16.msra.mxu0 %v1089_v38  ;;  %1118 = vmatpush3.bf16.msra.mxu1 %v1115_v56 }
  0x57   :  { %1187 = vmatprep.subr.bf16.mxu0 %v1329_v1  ;;  %1120 = vmatprep.subr.bf16.mxu1 %v1119_v59 }
  0x5a   :  { %1122 = vmatpush3.bf16.msra.mxu1 %v1119_v59 }
  0x5b   :  { %1124 = vmatprep.subr.bf16.mxu1 %v1448_v62 }
  0xb7   :  { %v72_v41 = vpop.permute.xlu0 %71 }
  0xb8   :  { %vm79_vm1 = vcmp.eq.s32.totalorder %v66_v40, %v72_v41  ;;  %v78_v44 = vpop.permute.xlu1 %77 }
  0xb9   :  { %919 = vmatmul.mubr.msk.f32.vlgmr.msra.gmra.mrb[0].mxu0 %vm79_vm1, %v1332_v42  ;;  %vm81_vm3 = vcmp.eq.s32.totalorder %v66_v40, %v78_v44 }
  0xba   :  { %921 = vmatprep.mubr.msk.f32.mxu0 %vm1330_vm0, %v1331_v10  ;;  %1189 = vmatpush3.bf16.msra.mxu0 %v1188_v3 }
  0xbb   :  { %v75_v43 = vpop.permute.xlu0 %74  ;;  %1190 = vmatprep.subr.bf16.mxu0 %v1329_v1 }
  0xbc   :  { %vm80_vm2 = vcmp.eq.s32.totalorder %v66_v40, %v75_v43 }
  0xbd   :  { %922 = vmatmul.mubr.msk.f32.gmra.mrb[2].mxu0 %vm80_vm2, %v1332_v42 }
  0xbe   :  { %924 = vmatprep.mubr.msk.f32.mxu0 %vm1330_vm0, %v1331_v10  ;;  %1192 = vmatpush3.bf16.msra.mxu0 %v1191_v5 }
  0xbf   :  { %1193 = vmatprep.subr.bf16.mxu0 %v1329_v1 }
  0xc1   :  { %925 = vmatmul.mubr.msk.f32.gmra.mrb[4].mxu0 %vm81_vm3, %v1332_v42 }
  0xc2   :  { %1064 = vmatprep.mubr.msk.f32.mxu0 %vm1330_vm0, %v1331_v10  ;;  %1195 = vmatpush3.bf16.msra.mxu0 %v1194_v8  ;;  %v189_v10 = vunpack.c.l.s4 %v1333_v9 }
  0xc3   :  { %1196 = vmatprep.subr.bf16.mxu0 %v1329_v1 }
  0xc4   :  { %v190_v11 = vunpack.c.0.s8 %v189_v10 }
  0xc6   :  { %v1454_v13 = vsub.s32 %v190_v11, %v192_v12 }
 0x18c   :  { %v170_v14 = vpop.f32.mrb[0].mxu0 }
 0x18d   :  { %v187_v15 = vcombine.high %v170_v14, %v170_v14  ;;  %v194_v16 = vrot.slane %v170_v14, %v1454_v13  ;;  %v920_v17 = vpop.f32.mrb[1].mxu0 }
 0x18e   :  { %v232_v17 = vld [vmem:[#allocation5 + $0x18] sm:$0xff] }
 0x18f   :  { %v201_v18 = vrot.slane %v187_v15, %v1454_v13  ;;  %v202_v19 = vcombine.high %v194_v16, %v194_v16  ;;  %v792_v21 = vrot.slane %v194_v16, 9 }
 0x190   :  { %v175_v20 = vpop.f32.mrb[2].mxu0 }
 0x191   :  { %v203_v22 = vcombine.high %v201_v18, %v201_v18  ;;  %v204_v23 = vcombine.high %v175_v20, %v175_v20  ;;  %v211_v24 = vrot.slane %v175_v20, %v1454_v13  ;;  %v923_v25 = vpop.f32.mrb[3].mxu0  ;;  %v406_v27 = vcombine.low %v194_v16, %v202_v19  ;;  %v231_v16 = vld [vmem:[#allocation5 + $0x10] sm:$0xff] }
 0x192   :  { %v254_v28 = vrot.slane %v202_v19, 7  ;;  %v257_v29 = vrot.slane %v201_v18, 7  ;;  %v534_v30 = vcombine.low %v202_v19, %v201_v18 }
 0x193   :  { %v218_v31 = vrot.slane %v204_v23, %v1454_v13  ;;  %v219_v32 = vcombine.high %v211_v24, %v211_v24  ;;  %v263_v33 = vrot.slane %v211_v24, 7  ;;  %v535_v34 = vcombine.low %v203_v22, %v211_v24 }
 0x194   :  { %v180_v35 = vpop.f32.mrb[4].mxu0  ;;  %v255_v36 = vsel %vm1459_vm10, %v792_v21, %v254_v28  ;;  %v256_v37 = vrot.slane %v254_v28, 2  ;;  %v259_v38 = vrot.slane %v257_v29, 2  ;;  %v260_v39 = vrot.slane %v203_v22, 7  ;;  %v233_v28 = vld [vmem:[#allocation5 + $0x20] sm:$0xff] }
 0x195   :  { %v220_v40 = vcombine.high %v218_v31, %v218_v31  ;;  %v793_v41 = vrot.slane %v219_v32, 9  ;;  %v267_v42 = vrot.slane %v218_v31, 7  ;;  %v423_v43 = vcombine.low %v219_v32, %v218_v31  ;;  %v926_v44 = vpop.f32.mrb[5].mxu0  ;;  %v235_v32 = vld [vmem:[#allocation5 + $0x30] sm:$0xff] }
 0x196   :  { %v227_v45 = vrot.slane %v180_v35, %v1454_v13  ;;  %v258_v46 = vsel %vm1459_vm10, %v256_v37, %v257_v29  ;;  %v261_v47 = vsel %vm1459_vm10, %v259_v38, %v260_v39  ;;  %v262_v48 = vrot.slane %v260_v39, 2  ;;  %v234_v29 = vld [vmem:[#allocation5 + $0x28] sm:$0xff]  ;;  %v239_v37 = vld [vmem:[#allocation5 + $0x50] sm:$0xff]  ;;  %v240_v38 = vld [vmem:[#allocation5 + $0x58] sm:$0xff] }
 0x197   :  { %v295_v49 = vcombine.low %v255_v36, %v258_v46  ;;  %v268_v50 = vsel %vm1459_vm10, %v793_v41, %v267_v42  ;;  %v269_v51 = vrot.slane %v267_v42, 2  ;;  %v270_v52 = vrot.slane %v220_v40, 7  ;;  %v238_v35 = vld [vmem:[#allocation5 + $0x48] sm:$0xff]  ;;  %v243_v42 = vld [vmem:[#allocation5 + $0x70] sm:$0xff] }
 0x198   :  { %v228_v53 = vcombine.high %v227_v45, %v227_v45  ;;  %v273_v54 = vrot.slane %v227_v45, 7  ;;  %v424_v55 = vcombine.low %v220_v40, %v227_v45  ;;  %v264_v56 = vsel %vm1459_vm10, %v262_v48, %v263_v33  ;;  %v236_v33 = vld [vmem:[#allocation5 + $0x38] sm:$0xff]  ;;  %v519_v46 = vld [vmem:[#allocation5 + $0x108] sm:$0xff]  ;;  %v520_v48 = vld [vmem:[#allocation5 + $0x110] sm:$0xff] }
 0x199   :  { %v296_v57 = vcombine.low %v261_v47, %v264_v56  ;;  %v303_v58 = vrot.slane %v295_v49, %v1454_v13  ;;  %v271_v59 = vsel %vm1459_vm10, %v269_v51, %v270_v52  ;;  %v272_v60 = vrot.slane %v270_v52, 2  ;;  %v521_v49 = vld [vmem:[#allocation5 + $0x118] sm:$0xff]  ;;  %v522_v51 = vld [vmem:[#allocation5 + $0x120] sm:$0xff]  ;;  %v523_v52 = vld [vmem:[#allocation5 + $0x128] sm:$0xff] }
 0x19a   :  { %v275_v61 = vrot.slane %v273_v54, 2  ;;  %v276_v63 = vrot.slane %v228_v53, 7  ;;  %v552_v0 = vcombine.low %v227_v45, %v228_v53  ;;  %v312_v2 = vcombine.low %v268_v50, %v271_v59  ;;  %v518_v45 = vld [vmem:[#allocation5 + $0x100] sm:$0xff] }
 0x19b   :  { %v310_v3 = vrot.slane %v296_v57, %v1454_v13  ;;  %v274_v4 = vsel %vm1459_vm10, %v272_v60, %v273_v54  ;;  %v407_v5 = vcombine.low %v201_v18, %v203_v22  ;;  %v414_v6 = vrot.slane %v406_v27, %v1454_v13  ;;  %v524_v54 = vld [vmem:[#allocation5 + $0x130] sm:$0xff]  ;;  %v526_v57 = vld [vmem:[#allocation5 + $0x140] sm:$0xff] }
 0x19c   :  { %v277_v7 = vsel %vm1459_vm10, %v275_v61, %v276_v63  ;;  %v320_v8 = vrot.slane %v312_v2, %v1454_v13  ;;  %v1486_v9 = vrot.slane %v423_v43, %v1454_v13  ;;  %v1489_v10 = vrot.slane %v424_v55, %v1454_v13  ;;  %v244_v43 = vld [vmem:[#allocation5 + $0x78] sm:$0xff]  ;;  %v528_v60 = vld [vmem:[#allocation5 + $0x150] sm:$0xff]  ;;  %v531_v2 = vld [vmem:[#allocation5 + $0x168] sm:$0xff] }
 0x19d   :  { %v311_v11 = vcombine.low %v303_v58, %v310_v3  ;;  %v313_v12 = vcombine.low %v274_v4, %v277_v7  ;;  %v421_v14 = vrot.slane %v407_v5, %v1454_v13  ;;  %v542_v15 = vrot.slane %v534_v30, %v1454_v13  ;;  %v525_v55 = vld [vmem:[#allocation5 + $0x138] sm:$0xff]  ;;  %v527_v58 = vld [vmem:[#allocation5 + $0x148] sm:$0xff]  ;;  %v532_v4 = vld [vmem:[#allocation5 + $0x170] sm:$0xff] }
 0x19e   :  { %v439_v18 = vcombine.low %v1486_v9, %v1489_v10  ;;  %v549_v19 = vrot.slane %v535_v34, %v1454_v13  ;;  %v551_v20 = vcombine.low %v218_v31, %v220_v40  ;;  %v1497_v21 = vrot.slane %v552_v0, %v1454_v13  ;;  %v241_v40 = vld [vmem:[#allocation5 + $0x60] sm:$0xff]  ;;  %v529_v61 = vld [vmem:[#allocation5 + $0x158] sm:$0xff]  ;;  %v676_v7 = vld [vmem:[#allocation7 + $0x30] sm:$0xff] }
 0x19f   :  { %959 = vmatprep.mubr.f32.mxu1 %v311_v11  ;;  %v327_v22 = vrot.slane %v313_v12, %v1454_v13  ;;  %v422_v23 = vcombine.low %v414_v6, %v421_v14  ;;  %v1127_v27 = vpack.c.bf16 %v232_v17, %v231_v16  ;;  %v1131_v31 = vpack.c.bf16 %v234_v29, %v233_v28  ;;  %v530_v0 = vld [vmem:[#allocation5 + $0x160] sm:$0xff]  ;;  %v533_v5 = vld [vmem:[#allocation5 + $0x178] sm:$0xff]  ;;  %v679_v11 = vld [vmem:[#allocation7 + $0x48] sm:$0xff] }
 0x1a0   :  { %v550_v24 = vcombine.low %v542_v15, %v549_v19  ;;  %v1501_v25 = vrot.slane %v551_v20, %v1454_v13  ;;  %v1135_v34 = vpack.c.bf16 %v236_v33, %v235_v32  ;;  %v237_v13 = vld [vmem:[#allocation5 + $0x40] sm:$0xff]  ;;  %v1143_v39 = vpack.c.bf16 %v240_v38, %v239_v37  ;;  %v680_v14 = vld [vmem:[#allocation7 + $0x50] sm:$0xff]  ;;  %v681_v15 = vld [vmem:[#allocation7 + $0x58] sm:$0xff] }
 0x1a1   :  { %v328_v26 = vcombine.low %v320_v8, %v327_v22  ;;  %v1139_v36 = vpack.c.bf16 %v238_v35, %v237_v13  ;;  %v1151_v44 = vpack.c.bf16 %v244_v43, %v243_v42  ;;  %v1155_v47 = vpack.c.bf16 %v519_v46, %v518_v45  ;;  %v677_v8 = vld [vmem:[#allocation7 + $0x38] sm:$0xff]  ;;  %v678_v10 = vld [vmem:[#allocation7 + $0x40] sm:$0xff]  ;;  %v684_v20 = vld [vmem:[#allocation7 + $0x70] sm:$0xff] }
 0x1a2   :  { %v567_v30 = vcombine.low %v1501_v25, %v1497_v21  ;;  %v1159_v50 = vpack.c.bf16 %v521_v49, %v520_v48  ;;  %v1163_v53 = vpack.c.bf16 %v523_v52, %v522_v51  ;;  %v1167_v56 = vpack.c.bf16 %v525_v55, %v524_v54  ;;  %v682_v17 = vld [vmem:[#allocation7 + $0x60] sm:$0xff]  ;;  %v685_v21 = vld [vmem:[#allocation7 + $0x78] sm:$0xff] }
 0x1a3   :  { %960 = vmatmul.mubr.f32.vlgmr.msra.gmra.mrb[0].mxu1 %v328_v26  ;;  %v1171_v59 = vpack.c.bf16 %v527_v58, %v526_v57  ;;  %v1175_v63 = vpack.c.bf16 %v529_v61, %v528_v60  ;;  %v1179_v3 = vpack.c.bf16 %v531_v2, %v530_v0  ;;  %v1183_v6 = vpack.c.bf16 %v533_v5, %v532_v4  ;;  %v794_v13 = vld [vmem:[%s1534_s3] ss:$0 sm:$0xff]  ;;  %s1295_s3 = scalar_lea.vmem %s777_s18, 32 }
 0x1a4   :  { %1126 = vmatpush3.bf16.msra.mxu1 %v1448_v62  ;;  %994 = vmatprep.mubr.f32.mxu1 %v422_v23  ;;  %v242_v62 = vld [vmem:[#allocation5 + $0x68] sm:$0xff]  ;;  %v1197_v9 = vpack.c.bf16 %v677_v8, %v676_v7  ;;  %v1200_v12 = vpack.c.bf16 %v679_v11, %v678_v10  ;;  %v1203_v16 = vpack.c.bf16 %v681_v15, %v680_v14  ;;  %p1296_p10 = scmp.ne.s32.totalorder %s777_s18, %s1295_s3  ;;  %p1301_p12 = scmp.lt.s32.totalorder %s1295_s3, %s1295_s3 }
 0x1a5   :  { %1128 = vmatprep.subr.bf16.mxu1 %v1127_v27  ;;  %v1147_v41 = vpack.c.bf16 %v242_v62, %v241_v40  ;;  %v1209_v22 = vpack.c.bf16 %v685_v21, %v684_v20 }
 0x1a6   :  { %1198 = vmatpush3.bf16.msra.mxu0 %v1197_v9  ;;  %p1302_p13 = por %p1301_p12, %p1300_p11 }
 0x1a7   :  { %1199 = vmatprep.subr.bf16.mxu0 %v1329_v1 }
 0x1a8   :  { %1130 = vmatpush3.bf16.msra.mxu1 %v1127_v27  ;;  %p1303_p0 = pnand %p1302_p13, %p1296_p10 }
 0x1a9   :  { %1132 = vmatprep.subr.bf16.mxu1 %v1131_v31 }
 0x1aa   :  { %1201 = vmatpush3.bf16.msra.mxu0 %v1200_v12 }
 0x1ab   :  { %1202 = vmatprep.subr.bf16.mxu0 %v1329_v1 }
 0x1ac   :  { %1134 = vmatpush3.bf16.msra.mxu1 %v1131_v31 }
 0x1ad   :  { %1136 = vmatprep.subr.bf16.mxu1 %v1135_v34 }
 0x1ae   :  { %1204 = vmatpush3.bf16.msra.mxu0 %v1203_v16 }
 0x1af   :  { %1205 = vmatprep.subr.bf16.mxu0 %v1329_v1 }
 0x1b0   :  { %1138 = vmatpush3.bf16.msra.mxu1 %v1135_v34 }
 0x1b1   :  { %1140 = vmatprep.subr.bf16.mxu1 %v1139_v36 }
 0x1b4   :  { %1142 = vmatpush3.bf16.msra.mxu1 %v1139_v36 }
 0x1b5   :  { %1144 = vmatprep.subr.bf16.mxu1 %v1143_v39 }
 0x1b8   :  { %1146 = vmatpush3.bf16.msra.mxu1 %v1143_v39 }
 0x1b9   :  { %1148 = vmatprep.subr.bf16.mxu1 %v1147_v41 }
 0x1bc   :  { %1150 = vmatpush3.bf16.msra.mxu1 %v1147_v41  ;;  %v795_v41 = vld [vmem:[%s1536_s5] ss:$0 sm:$0xff] }
 0x1bd   :  { %1152 = vmatprep.subr.bf16.mxu1 %v1151_v44 }
 0x1c0   :  { %1154 = vmatpush3.bf16.msra.mxu1 %v1151_v44 }
 0x1c1   :  { %1156 = vmatprep.subr.bf16.mxu1 %v1155_v47 }
 0x1c3   :  { %995 = vmatmul.mubr.f32.vlgmr.msra.gmra.mrb[0].mxu1 %v439_v18  ;;  %v683_v18 = vld [vmem:[#allocation7 + $0x68] sm:$0xff] }
 0x1c4   :  { %1158 = vmatpush3.bf16.msra.mxu1 %v1155_v47  ;;  %1029 = vmatprep.mubr.f32.mxu1 %v550_v24  ;;  %v1206_v19 = vpack.c.bf16 %v683_v18, %v682_v17 }
 0x1c5   :  { %1160 = vmatprep.subr.bf16.mxu1 %v1159_v50 }
 0x1c6   :  { %1207 = vmatpush3.bf16.msra.mxu0 %v1206_v19 }
 0x1c7   :  { %1208 = vmatprep.subr.bf16.mxu0 %v1329_v1 }
 0x1c8   :  { %1162 = vmatpush3.bf16.msra.mxu1 %v1159_v50 }
 0x1c9   :  { %1164 = vmatprep.subr.bf16.mxu1 %v1163_v53 }
 0x1ca   :  { %1210 = vmatpush3.bf16.msra.mxu0 %v1209_v22 }
 0x1cc   :  { %1166 = vmatpush3.bf16.msra.mxu1 %v1163_v53 }
 0x1cd   :  { %1168 = vmatprep.subr.bf16.mxu1 %v1167_v56 }
 0x1d0   :  { %1170 = vmatpush3.bf16.msra.mxu1 %v1167_v56 }
 0x1d1   :  { %1172 = vmatprep.subr.bf16.mxu1 %v1171_v59 }
 0x1d4   :  { %1174 = vmatpush3.bf16.msra.mxu1 %v1171_v59 }
 0x1d5   :  { %1176 = vmatprep.subr.bf16.mxu1 %v1175_v63 }
 0x1d8   :  { %1178 = vmatpush3.bf16.msra.mxu1 %v1175_v63 }
 0x1d9   :  { %1180 = vmatprep.subr.bf16.mxu1 %v1179_v3 }
 0x1dc   :  { %1182 = vmatpush3.bf16.msra.mxu1 %v1179_v3 }
 0x1dd   :  { %1184 = vmatprep.subr.bf16.mxu1 %v1183_v6 }
 0x1e0   :  { %1186 = vmatpush3.bf16.msra.mxu1 %v1183_v6 }
 0x1e3   :  { %1030 = vmatmul.mubr.f32.vlgmr.msra.gmra.mrb[0].mxu1 %v567_v30 }
 0x2b6   :  { %v1031_v23 = vpop.f32.mrb[0].mxu1 }
 0x2b7   :  { %v653_v24 = vrot.slane %v1031_v23, 4  ;;  %v636_v25 = vpop.f32.mrb[1].mxu1 }
 0x2b8   :  { %v647_v26 = vrot.slane %v636_v25, 4 }
 0x2b9   :  { %v654_v27 = vmax.f32 %v1031_v23, %v653_v24 }
 0x2ba   :  { %v648_v28 = vmax.f32 %v636_v25, %v647_v26 }
 0x2bb   :  { %v655_v29 = vrot.slane %v654_v27, 2 }
 0x2bc   :  { %v649_v30 = vrot.slane %v648_v28, 2 }
 0x2bd   :  { %v656_v31 = vmax.f32 %v654_v27, %v655_v29 }
 0x2be   :  { %v650_v32 = vmax.f32 %v648_v28, %v649_v30 }
 0x2bf   :  { %v657_v33 = vrot.slane %v656_v31, 1 }
 0x2c0   :  { %v651_v34 = vrot.slane %v650_v32, 1 }
 0x2c1   :  { %v658_v35 = vmax.f32 %v656_v31, %v657_v33 }
 0x2c2   :  { %v652_v36 = vmax.f32 %v650_v32, %v651_v34 }
 0x2c3   :  { %v667_v1 = vadd.f32 %v794_v13, %v658_v35 }
 0x2c4   :  { %v666_v37 = vadd.f32 %v794_v13, %v652_v36 }
 0x2c5   :  { %v669_v38 = vmax.f32 %v667_v1, 0.0 }
 0x2c6   :  { %v668_v39 = vmax.f32 %v666_v37, 0.0 }
 0x2c7   :  { %v695_v40 = vrot.slane %v669_v38, 7 }
 0x2c9   :  { %v697_v62 = vsel %vm696_vm11, %v695_v40, %v668_v39 }
 0x2ca   :  { %1065 = vmatmul.mubr.f32.vlgmr.msra.gmra.mrb[6].mxu0 %v697_v62 }
 0x39d   :  { %v765_v42 = vpop.f32.mrb[6].mxu0 }
 0x39e   :  { %v766_v43 = vadd.f32 %v795_v41, %v765_v42  ;;  %v1066_v44 = vpop.f32.mrb[7].mxu0 }
 0x3a0   :  { %769 = vst [vmem:[#allocation8] sm:$0x3] %v766_v43 }
 0x3a1   :  { %1306 = shalt.err (!%p1303_p0)
}
 0x3a2   :  { %s1307_s2 = scalar_lea.hbm %s1537_s6, 32 }
 0x3a3   :  { %p1308_p1 = scmp.ne.s32.totalorder %s1537_s6, %s1307_s2  ;;  %p1311_p2 = scmp.lt.u32.totalorder %s1307_s2, %s1537_s6 }
 0x3a5   :  { %p1313_p3 = pnand %p1311_p2, %p1308_p1 }
 0x3a7   :  { %1316 = shalt.err (!%p1313_p3)
}
 0x3a8   :  { %779 = dma.vmem_to_hbm [thread:$0]  %s777_s18, 32, %s1537_s6, [#allocation4]  }
 0x3a9   :  { %1321 = dma.done.wait [#allocation4], 32  }
 0x3aa   :  { %1322 = vsyncadd [#allocation4], 4294967264 }
 0x3ab   :  { %783 = vsyncpa [#allocation3], 1 }
 0x3ac   :  { %784 = vsyncpa [#allocation6], 1 }
 0x3ad   :  { %785 = vsyncpa [#allocation4], 1 }

</bundles_post_ra>
